<compile_context>
chip_gen: v5e
topology: v5e:2x2
jax: 0.10.0
libtpu: 0.0.40
codegen_flags: <defaults>
</compile_context>

<pallas_src>
import functools
import math

import jax
import jax.numpy as jnp
from jax.experimental import pallas as pl
from jax.experimental.pallas import tpu as pltpu


def rms_norm_kernel(x_ref, w_ref, o_ref, *, eps, inv_d):
    # x_ref: (rows_tile, d_pad); w_ref: (1, d_pad) -> broadcasts over rows.
    x = x_ref[...]                                   # original dtype
    xf = x.astype(jnp.float32)                       # f32 reduction (required on v5e)
    ms = jnp.sum(xf * xf, axis=-1, keepdims=True) * inv_d   # XLU reduce + VPU mul
    scale = jax.lax.rsqrt(ms + eps)                  # (rows_tile, 1) f32, EUP slot
    # Cast only the small (rows_tile,1)/(1,D) operands; the tile-wide multiply
    # stays in the input dtype so no f32 copy of the tile is kept live.
    o_ref[...] = (x * scale.astype(x.dtype) * w_ref[...].astype(x.dtype)).astype(o_ref.dtype)


def _cdiv(a, b):
    return -(-a // b)


def _round_up(a, b):
    return _cdiv(a, b) * b


def _vmem_capacity_bytes():
    # Physical VMEM per TensorCore; fall back to the smallest current value (v7x: 64 MiB).
    try:
        return int(pltpu.get_tpu_info().vmem_capacity_bytes)
    except Exception:
        return 64 * 1024 * 1024


def _choose_rows_tile(rows, emb_dim, itemsize, target_rows):
    # Sublane granularity: 8 rows for 4-byte dtypes, 16 for bf16, 32 for 8-bit.
    sublane = max(8, 32 // itemsize)
    vmem = _vmem_capacity_bytes()
    # Conservative ~60% of physical VMEM: leaves headroom for Mosaic internal
    # scratch and the weight row even on v7x's 64 MiB parts.
    budget = (vmem * 3) // 5
    # Dtype-aware byte model: double-buffered input + output tiles; the f32
    # reduction temporary only costs extra VMEM for sub-32-bit inputs.
    f32_temp = 4 if itemsize < 4 else 0
    per_row = emb_dim * (4 * itemsize + f32_temp)
    fit_rows = max(sublane, budget // per_row)
    rows_tile = max(sublane, (min(target_rows, fit_rows) // sublane) * sublane)
    # Never make the tile bigger than the (sublane-padded) row count.
    rows_tile = min(rows_tile, _round_up(rows, sublane))
    # v7x has 2 TensorCores/chip: keep >= 4 "parallel" steps (>= 2 per core so
    # each core still double-buffers its DMAs) and an even step count when
    # there is enough work.  Harmless no-op on single-TC v5e/v6e.
    if rows >= 4 * sublane:
        max_tile = max(sublane, (rows // 4 // sublane) * sublane)
        rows_tile = min(rows_tile, max_tile)
        while _cdiv(rows, rows_tile) % 2 == 1 and rows_tile > sublane:
            rows_tile -= sublane
    return rows_tile


def rms_norm(x, weight, eps=1e-5, target_rows_tile=512):
    """x: (..., emb_dim); weight: (emb_dim,). Returns same shape/dtype as x."""
    orig_shape = x.shape
    emb_dim = orig_shape[-1]
    rows = math.prod(orig_shape[:-1]) if len(orig_shape) > 1 else 1

    itemsize = jnp.dtype(x.dtype).itemsize
    w_itemsize = jnp.dtype(weight.dtype).itemsize

    x2d = x.reshape(rows, emb_dim)
    w2d = weight.reshape(1, emb_dim)

    # Lane-dense output: pad the feature (lane) axis to a multiple of 128 only
    # when needed, so stores are unmasked.  inv_d keeps the TRUE emb_dim, and
    # the zero lane padding does not change the per-row sum of squares.
    d_pad = _round_up(emb_dim, 128)
    if d_pad != emb_dim:
        x2d = jnp.pad(x2d, ((0, 0), (0, d_pad - emb_dim)))
        w2d = jnp.pad(w2d, ((0, 0), (0, d_pad - emb_dim)))

    rows_tile = _choose_rows_tile(rows, d_pad, itemsize, target_rows_tile)
    # No row padding: ragged last block — rows are independent and Pallas masks
    # the out-of-range writeback, so no extra HBM pass or slice copy.
    grid = _cdiv(rows, rows_tile)

    tile_elems = rows_tile * d_pad
    f32_temp = 4 if itemsize < 4 else 0
    vmem_needed = (
        2 * 2 * tile_elems * itemsize   # double-buffered input + output tiles
        + tile_elems * f32_temp         # transient f32 reduction copy (bf16/fp8 only)
        + 2 * d_pad * w_itemsize        # weight row (double-buffered)
    )
    vmem_cap = _vmem_capacity_bytes()
    vmem_limit = int(min(max(vmem_needed * 1.5 + (4 << 20), 16 << 20),
                         vmem_cap * 0.75))

    kernel = functools.partial(rms_norm_kernel, eps=float(eps), inv_d=1.0 / emb_dim)

    out = pl.pallas_call(
        kernel,
        out_shape=jax.ShapeDtypeStruct((rows, d_pad), x.dtype),
        grid_spec=pltpu.PrefetchScalarGridSpec(
            num_scalar_prefetch=0,
            grid=(grid,),
            in_specs=[
                pl.BlockSpec((rows_tile, d_pad), lambda i: (i, 0)),
                # Invariant operand; default buffering kept for lowering safety
                # (single-buffering it is a negligible VMEM saving here).
                pl.BlockSpec((1, d_pad), lambda i: (0, 0)),
            ],
            out_specs=pl.BlockSpec((rows_tile, d_pad), lambda i: (i, 0)),
        ),
        compiler_params=pltpu.CompilerParams(
            dimension_semantics=("parallel",),
            vmem_limit_bytes=vmem_limit,
        ),
        cost_estimate=pl.CostEstimate(
            flops=5 * rows * emb_dim,
            transcendentals=rows,
            bytes_accessed=2 * rows * d_pad * itemsize + d_pad * w_itemsize,
        ),
    )(x2d, w2d)

    if d_pad != emb_dim:
        out = out[:, :emb_dim]
    return out.reshape(orig_shape)


if __name__ == "__main__":
    key = jax.random.PRNGKey(0)
    batch, seq, emb_dim = 2, 8, 32
    x = jax.random.normal(key, (batch, seq, emb_dim), dtype=jnp.float32)
    # Deterministic parameter init, matching nn.Parameter(torch.ones(emb_dim)).float()
    weight = jnp.ones((emb_dim,), dtype=jnp.float32)

    out = rms_norm(x, weight, eps=1e-5)
    jax.block_until_ready(out)

    # Reference in plain JAX (matches torch: mean(x^2) -> rsqrt -> * weight -> cast)
    means = jnp.mean(x.astype(jnp.float32) ** 2, axis=-1, keepdims=True)
    ref = (x * jax.lax.rsqrt(means + 1e-5) * weight).astype(x.dtype)
    assert out.shape == x.shape and out.dtype == x.dtype
    assert jnp.allclose(out, ref, atol=1e-5, rtol=1e-5), "mismatch vs reference"

    print("KERNEL_OK")
</pallas_src>

<mosaic_0001>
module attributes {stable_mosaic.version = 11 : i64} {
  func.func @rms_norm_kernel(%arg0: i32, %arg1: memref<16x128xf32, #tpu.memory_space<vmem>>, %arg2: memref<1x128xf32, #tpu.memory_space<vmem>>, %arg3: memref<16x128xf32, #tpu.memory_space<vmem>>) attributes {dimension_semantics = [#tpu.dimension_semantics<parallel>], iteration_bounds = array<i64: 1>, scalar_prefetch = 0 : i64, scratch_operands = 0 : i64, tpu.core_type = #tpu.core_type<tc>, window_params = [{transform_indices = @transform_0, window_bounds = array<i64: 16, 128>}, {pipeline_mode = #tpu.pipeline_mode<synchronous>, transform_indices = @transform_1, window_bounds = array<i64: 1, 128>}, {transform_indices = @transform_2, window_bounds = array<i64: 16, 128>}]} {
    %c0 = arith.constant 0 : index
    %c0_0 = arith.constant 0 : index
    %0 = vector.load %arg1[%c0, %c0_0] : memref<16x128xf32, #tpu.memory_space<vmem>>, vector<16x128xf32>
    %1 = arith.mulf %0, %0 : vector<16x128xf32>
    %cst = arith.constant dense<0.000000e+00> : vector<16xf32>
    %2 = vector.multi_reduction <add>, %1, %cst [1] : vector<16x128xf32> to vector<16xf32>
    %3 = vector.shape_cast %2 : vector<16xf32> to vector<16x1xf32>
    %cst_1 = arith.constant 3.125000e-02 : f32
    %4 = vector.broadcast %cst_1 : f32 to vector<16x1xf32>
    %5 = arith.mulf %3, %4 : vector<16x1xf32>
    %cst_2 = arith.constant 9.99999974E-6 : f32
    %6 = vector.broadcast %cst_2 : f32 to vector<16x1xf32>
    %7 = arith.addf %5, %6 : vector<16x1xf32>
    %8 = math.rsqrt %7 : vector<16x1xf32>
    %9 = vector.broadcast %8 : vector<16x1xf32> to vector<16x128xf32>
    %10 = arith.mulf %0, %9 : vector<16x128xf32>
    %c0_3 = arith.constant 0 : index
    %c0_4 = arith.constant 0 : index
    %11 = vector.load %arg2[%c0_3, %c0_4] : memref<1x128xf32, #tpu.memory_space<vmem>>, vector<1x128xf32>
    %12 = vector.broadcast %11 : vector<1x128xf32> to vector<16x128xf32>
    %13 = arith.mulf %10, %12 : vector<16x128xf32>
    %c0_5 = arith.constant 0 : index
    %c0_6 = arith.constant 0 : index
    %14 = vector.load %arg3[%c0_5, %c0_6] : memref<16x128xf32, #tpu.memory_space<vmem>>, vector<16x128xf32>
    tpu.vector_store %arg3[%c0_5, %c0_6], %13 {strides = array<i32>} : memref<16x128xf32, #tpu.memory_space<vmem>>, vector<16x128xf32>,
    return
  }
  func.func @transform_0(%arg0: i32) -> (i32, i32) {
    %c0_i32 = arith.constant 0 : i32
    %c0_i32_0 = arith.constant 0 : i32
    return %arg0, %c0_i32 : i32, i32
  }
  func.func @transform_1(%arg0: i32) -> (i32, i32) {
    %c0_i32 = arith.constant 0 : i32
    %c0_i32_0 = arith.constant 0 : i32
    %c0_i32_1 = arith.constant 0 : i32
    return %c0_i32, %c0_i32_0 : i32, i32
  }
  func.func @transform_2(%arg0: i32) -> (i32, i32) {
    %c0_i32 = arith.constant 0 : i32
    %c0_i32_0 = arith.constant 0 : i32
    return %arg0, %c0_i32 : i32, i32
  }
}

</mosaic_0001>

<bundles_post_ra>
// kernel: tpu_custom_call.1
= control target key start
LH: loop header
LB: loop body
LE: loop exit
PB: predicated region body
PF: predicated region fallthrough
CT: control target
= control target key end

     0   :  { %7 = vsyncpa [#allocation3], 0  ;;  %s227_s0 = inlined_call_operand.hbm [shape: f32[16,128], index: 0, kind: input, shape index: {}]   ;;  %s228_s1 = inlined_call_operand.hbm [shape: f32[1,128], index: 1, kind: input, shape index: {}]   ;;  %s229_s2 = inlined_call_operand.hbm [shape: f32[16,128], index: 2, kind: output, shape index: {}]  }
   0x1   :  { %8 = vsyncpa [#allocation6], 0 }
   0x2   :  { %9 = vsyncpa [#allocation4], 0  ;;  %s14_s11 = sshll.u32 %s227_s0, 4  ;;  %s192_s12 = smov [#allocation2]   ;;  %s15_s11 = int_to_ptr.hbm [resolvable:$true] %s14_s11 }
   0x3   :  { %s16_s13 = sshll.u32 %s192_s12, 4  ;;  %s28_s16 = sshll.u32 %s228_s1, 4  ;;  %s17_s13 = int_to_ptr.vmem [resolvable:$true] %s16_s13  ;;  %s29_s16 = int_to_ptr.hbm [resolvable:$true] %s28_s16 }
   0x4   :  { %s193_s17 = smov 128   ;;  %s194_s18 = smov 8  }
   0x5   :  { %22 = dma.hbm_to_vmem [thread:$0]  %s15_s11, 256, %s17_s13, [#allocation3], %s193_s17, %s193_s17, %s194_s18  }
   0x6   :  { %s195_s19 = smov [#allocation5]  }
   0x7   :  { %s30_s20 = sshll.u32 %s195_s19, 4  ;;  %s31_s20 = int_to_ptr.vmem [resolvable:$true] %s30_s20 }
   0x8   :  { %33 = dma.hbm_to_vmem [thread:$0]  %s29_s16, 16, %s31_s20, [#allocation6]  }
   0x9   :  { %186 = dma.done.wait [#allocation3], 256  }
   0xa   :  { %187 = vsyncadd [#allocation3], 4294967040 }
   0xb   :  { %188 = dma.done.wait [#allocation6], 16  }
   0xc   :  { %189 = vsyncadd [#allocation6], 4294967280  ;;  %v42_v0 = vld [vmem:[#allocation2] sm:$0xff]  ;;  %v43_v2 = vld [vmem:[#allocation2 + $0x8] sm:$0xff]  ;;  %s196_s0 = smov [#allocation7]   ;;  %s90_s23 = sshll.u32 %s229_s2, 4  ;;  %s91_s23 = int_to_ptr.hbm [resolvable:$true] %s90_s23 }
   0xd   :  { %v44_v1 = vmul.f32 %v42_v0, %v42_v0  ;;  %v45_v3 = vmul.f32 %v43_v2, %v43_v2  ;;  %v109_v18 = vld [vmem:[#allocation5] ss:$0 sm:$0xff]  ;;  %s88_s1 = sshll.u32 %s196_s0, 4  ;;  %s89_s1 = int_to_ptr.vmem [resolvable:$true] %s88_s1 }
   0xf   :  { %46 = vadd.xlane.f32.xlu0 %v44_v1 }
  0x17   :  { %48 = vadd.xlane.f32.xlu0 %v45_v3 }
  0x82   :  { %v47_v4 = vpop.xlane.xlu0 %46 }
  0x83   :  { %v50_v5 = vmul.f32 0.03125, %v47_v4 }
  0x85   :  { %v52_v6 = vadd.f32 1e-05, %v50_v5 }
  0x87   :  { %110 = vrsqrt.f32 %v52_v6  ;;  %vm60_vm1 = vweird.f32 %v52_v6 }
  0x8a   :  { %v49_v7 = vpop.xlane.xlu0 %48 }
  0x8b   :  { %v51_v8 = vmul.f32 0.03125, %v49_v7 }
  0x8d   :  { %v111_v9 = vpop.eup %110  ;;  %v53_v10 = vadd.f32 1e-05, %v51_v8 }
  0x8e   :  { %v55_v11 = vmul.f32 %v111_v9, %v52_v6  ;;  %vm61_vm0 = vweird.f32 %v111_v9 }
  0x8f   :  { %112 = vrsqrt.f32 %v53_v10  ;;  %vm62_vm2 = vmor %vm60_vm1, %vm61_vm0  ;;  %vm70_vm4 = vweird.f32 %v53_v10 }
  0x90   :  { %v56_v12 = vmul.f32 %v111_v9, %v55_v11 }
  0x92   :  { %v57_v13 = vmul.f32 0.5, %v56_v12 }
  0x94   :  { %v58_v14 = vsub.f32 1.5, %v57_v13 }
  0x95   :  { %v113_v15 = vpop.eup %112 }
  0x96   :  { %v59_v16 = vmul.f32 %v111_v9, %v58_v14  ;;  %v65_v17 = vmul.f32 %v113_v15, %v53_v10  ;;  %vm71_vm3 = vweird.f32 %v113_v15 }
  0x97   :  { %vm72_vm5 = vmor %vm70_vm4, %vm71_vm3 }
  0x98   :  { %v63_v19 = vsel %vm62_vm2, %v111_v9, %v59_v16  ;;  %v66_v20 = vmul.f32 %v113_v15, %v65_v17 }
  0x99   :  { %v74_v21 = vmul.f32 %v63_v19, %v42_v0 }
  0x9a   :  { %v67_v22 = vmul.f32 0.5, %v66_v20 }
  0x9b   :  { %v80_v23 = vmul.f32 %v109_v18, %v74_v21 }
  0x9c   :  { %v68_v24 = vsub.f32 1.5, %v67_v22 }
  0x9d   :  { %82 = vst [vmem:[#allocation7] sm:$0xff] %v80_v23 }
  0x9e   :  { %v69_v25 = vmul.f32 %v113_v15, %v68_v24 }
  0xa0   :  { %v73_v26 = vsel %vm72_vm5, %v113_v15, %v69_v25 }
  0xa1   :  { %v75_v27 = vmul.f32 %v73_v26, %v43_v2 }
  0xa3   :  { %v81_v28 = vmul.f32 %v109_v18, %v75_v27 }
  0xa5   :  { %83 = vst [vmem:[#allocation7 + $0x8] sm:$0xff] %v81_v28 }
  0xa6   :  { %96 = dma.vmem_to_hbm [thread:$0]  %s89_s1, 256, %s91_s23, [#allocation4], %s193_s17, %s193_s17, %s194_s18  }
  0xa7   :  { %190 = dma.done.wait [#allocation4], 256  }
  0xa8   :  { %191 = vsyncadd [#allocation4], 4294967040 }
  0xa9   :  { %101 = vsyncpa [#allocation3], 1 }
  0xaa   :  { %102 = vsyncpa [#allocation6], 1 }
  0xab   :  { %103 = vsyncpa [#allocation4], 1 }

</bundles_post_ra>
